<compile_context>
chip_gen: v6e
topology: v6e:2x2x1
jax: 0.10.0
libtpu: 0.0.40
codegen_flags: <defaults>
</compile_context>

<pallas_src>
import functools

import jax
import jax.numpy as jnp
from jax.experimental import pallas as pl
from jax.experimental.pallas import tpu as pltpu

R = 10.9861
P0 = 0.5
K = 1.0
BETA = 1.5

_LANE = 128
_SUB = 16                       # sublane alignment safe for both f32 and bf16 preds blocks
_VMEM_BUDGET = 6 * 1024 * 1024  # double-buffered working-set budget (fits v5e default)


def _logistic_loss_kernel(preds_ref, labels_ref, tab_ref, loss_ref, *,
                          ignore_index, invalid_fill):
    preds = preds_ref[...].astype(jnp.float32)      # [C, TS, 128]
    lab_raw = labels_ref[...]                       # [TS, 128] int32 (raw; may be ignore/pad)
    C = preds.shape[0]

    valid = lab_raw != ignore_index
    lab = jnp.clip(lab_raw, 0, C - 1)               # ignored/padded rows index class 0; masked below

    # Numerically-stable softmax numerator over the class axis.  Class is the leading
    # (non-minor) axis, so the reduce is pure elementwise max/add over C full-vreg slabs
    # (no cross-lane / XLU work).
    mx = jnp.max(preds, axis=0)                     # [TS, 128]
    ex = jnp.exp(preds - mx)                        # [C, TS, 128]
    denom = jnp.sum(ex, axis=0)                     # [TS, 128]

    # Gather the true-class numerator and per-class alpha / h / factor with one shared
    # set of class compares (VPU selects + SMEM scalar broadcasts).  Kept off the MXU:
    # C is tiny, a 2-row matmul would be pure overhead.
    p_num = jnp.zeros_like(denom)
    a = jnp.zeros_like(denom)
    h = jnp.zeros_like(denom)
    fac = jnp.zeros_like(denom)
    for c in range(C):                              # C is static & tiny -> unrolled
        sel = lab == c
        p_num = jnp.where(sel, ex[c], p_num)
        a = jnp.where(sel, tab_ref[0, c], a)        # alpha[c]
        h = jnp.where(sel, tab_ref[1, c], h)        # h[c]   (precomputed wrapper-side)
        fac = jnp.where(sel, tab_ref[2, c], fac)    # factor[c]

    # True-class softmax prob (only this value is normalized; the full softmax is never
    # materialized).
    p = p_num / denom                               # [TS, 128]
    # TODO(synk): pl.reciprocal(approx=True) + one Newton step would move this divide to
    # the EUP, but the kernel is HBM-bound after the layout fix, so keep the exact divide.

    # Logistic loss.
    e_l = jnp.exp(-R * (p - a))
    loss = (K * P0 * e_l / (K + P0 * (e_l - 1.0)) - h) * BETA
    loss = fac * loss

    # Fused ignore-index / padding mask: -inf for the sort path, 0 for the sum path.
    loss_ref[...] = jnp.where(valid, loss, jnp.float32(invalid_fill))


def _round_up(x, m):
    return ((x + m - 1) // m) * m


def _per_row_loss(preds2d, labels1d, alpha, fac_tab, ignore_index, invalid_fill):
    """Masked per-row logistic loss.

    preds2d [M, C], labels1d [M] i32 -> [M_pad] f32, with `invalid_fill` written for
    rows whose label == ignore_index and for padding rows.
    """
    M, C = preds2d.shape

    # Per-class h table computed ONCE wrapper-side and packed with alpha/factor into one
    # small SMEM table (rows: alpha, h, factor).
    alpha = alpha.astype(jnp.float32)
    e_h = jnp.exp(-R * (1.0 - alpha))
    h_tab = K * P0 * e_h / (K + P0 * (e_h - 1.0))
    tab = jnp.stack([alpha, h_tab, fac_tab.astype(jnp.float32)])      # [3, C]

    # Tile sizing: rows of 128 lanes, sublane-aligned, sized from the VMEM budget so the
    # double-buffered working set stays well under the smallest default scoped limit.
    # Keep >= 2 grid steps when there's enough work so v7x's 2 TCs both run (parallel axis).
    rows = _round_up(pl.cdiv(M, _LANE), _SUB)
    itemsize = preds2d.dtype.itemsize
    per_row_bytes = 2 * _LANE * (C * itemsize + 4 + 4)    # 2x = double buffering
    ts = max(_SUB, (_VMEM_BUDGET // per_row_bytes) // _SUB * _SUB)
    ts = min(ts, rows)
    if rows >= 2 * _SUB:
        ts = min(ts, _round_up(pl.cdiv(rows, 2), _SUB))
    n_tiles = pl.cdiv(rows, ts)
    rows_pad = n_tiles * ts
    M_pad = rows_pad * _LANE

    # Lane/sublane-dense relayout: classes lead, rows split into (rows_pad, 128) slabs.
    # transpose + pad + reshape (row-major contiguous) — no zeros+scatter extra HBM pass.
    # TODO(synk): if the producer emitted class-major (and bf16) preds this relayout
    # would disappear entirely.
    preds_cm = jnp.pad(preds2d.T, ((0, 0), (0, M_pad - M))).reshape(C, rows_pad, _LANE)
    labels_rm = jnp.pad(labels1d.astype(jnp.int32), (0, M_pad - M),
                        constant_values=ignore_index).reshape(rows_pad, _LANE)

    kernel = functools.partial(_logistic_loss_kernel,
                               ignore_index=ignore_index,
                               invalid_fill=invalid_fill)
    out = pl.pallas_call(
        kernel,
        out_shape=jax.ShapeDtypeStruct((rows_pad, _LANE), jnp.float32),
        grid=(n_tiles,),
        in_specs=[
            pl.BlockSpec((C, ts, _LANE), lambda i: (0, i, 0)),          # preds
            pl.BlockSpec((ts, _LANE), lambda i: (i, 0)),                # labels
            pl.BlockSpec(memory_space=pltpu.MemorySpace.SMEM),          # [3, C] tables
        ],
        out_specs=pl.BlockSpec((ts, _LANE), lambda i: (i, 0)),
        compiler_params=pltpu.CompilerParams(
            dimension_semantics=("parallel",)),     # row tiles independent -> megacore
    )(preds_cm, labels_rm, tab)
    return out.reshape(-1)                          # [M_pad]


def logistic_loss_forward(preds, labels, alpha, factor, ignore_index=-1,
                          sort_loss=True, size_average=True):
    """Matches logistic_loss.forward: preds [B,N,C] or [B,C], labels [B,N] or [B]."""
    C = preds.shape[-1]
    preds2d = preds.reshape(-1, C)                  # keep input dtype (bf16 passes through)
    labels1d = labels.reshape(-1).astype(jnp.int32)
    M = preds2d.shape[0]

    # Per-class factor gather table (valid labels only index 0..C-1).
    # TODO(synk): PyTorch would raise if a label indexed past len(factor); here the
    # table is truncated/padded to C entries instead.
    factor = factor.astype(jnp.float32)
    NF = factor.shape[0]
    fac_tab = factor[:C] if NF >= C else jnp.concatenate(
        [factor, jnp.ones((C - NF,), jnp.float32)])

    fill = float("-inf") if sort_loss else 0.0
    loss_pad = _per_row_loss(preds2d, labels1d, alpha, fac_tab, ignore_index, fill)

    if sort_loss:
        # TODO(synk): PyTorch drops ignored rows before the `[:20]` slice (dynamic
        # shape); here invalid/padded rows are -inf, exact while >= 20 valid rows exist.
        k = min(20, M)
        top = jax.lax.top_k(loss_pad, k)[0]
        return jnp.mean(top)
    else:
        s = jnp.sum(loss_pad)                       # invalid/padded rows are exactly 0
        if size_average:
            n_valid = jnp.sum((labels1d != ignore_index).astype(jnp.float32))
            return s / jnp.maximum(n_valid, 1.0)
        return s


def _reference_rowloss(preds, labels, alpha, factor):
    """Pure-JAX per-row loss mirroring the PyTorch code (valid-labels case)."""
    C = preds.shape[-1]
    p2 = preds.reshape(-1, C).astype(jnp.float32)
    l1 = labels.reshape(-1)
    sm = jax.nn.softmax(p2, axis=1)
    psm = sm[jnp.arange(p2.shape[0]), l1]
    a = alpha[l1]
    fac = factor[l1]
    e_h = jnp.exp(-R * (1.0 - a))
    h = K * P0 * e_h / (K + P0 * (e_h - 1.0))
    e_l = jnp.exp(-R * (psm - a))
    loss = (K * P0 * e_l / (K + P0 * (e_l - 1.0)) - h) * BETA
    return fac * loss                               # [M]


if __name__ == "__main__":
    # Module parameters (deterministic, from __init__ defaults):
    #   alpha = 0.3, num_classes = 2  ->  alpha table [0.3, 0.3]
    #   factor = [1.0, 1.0, 0.8]
    num_classes = 2
    alpha = jnp.full((num_classes,), 0.3, dtype=jnp.float32)
    factor = jnp.array([1.0, 1.0, 0.8], dtype=jnp.float32)

    # Small example: B=2 batches, N=16 boxes, C=2 classes -> M=32 rows (>= 20).
    key = jax.random.PRNGKey(0)
    kp, kl = jax.random.split(key)
    preds = jax.random.normal(kp, (2, 16, num_classes), dtype=jnp.float32)
    labels = jax.random.randint(kl, (2, 16), 0, num_classes, dtype=jnp.int32)

    row_ref = _reference_rowloss(preds, labels, alpha, factor)

    # sort_loss=True path (module default): mean of top-20 of the descending sort.
    out_sort = jax.block_until_ready(logistic_loss_forward(preds, labels, alpha, factor))
    ref_sort = jnp.mean(jax.lax.top_k(row_ref, 20)[0])
    assert jnp.allclose(out_sort, ref_sort, rtol=1e-4, atol=1e-4), (out_sort, ref_sort)

    # sort_loss=False, size_average=True path: mean over all (valid) rows.
    out_mean = jax.block_until_ready(
        logistic_loss_forward(preds, labels, alpha, factor, sort_loss=False))
    ref_mean = jnp.mean(row_ref)
    assert jnp.allclose(out_mean, ref_mean, rtol=1e-4, atol=1e-4), (out_mean, ref_mean)

    print("KERNEL_OK")
</pallas_src>

<mosaic_0001>
module attributes {stable_mosaic.version = 11 : i64} {
  func.func @_logistic_loss_kernel(%arg0: i32, %arg1: memref<2x16x128xf32, #tpu.memory_space<vmem>>, %arg2: memref<16x128xi32, #tpu.memory_space<vmem>>, %arg3: memref<3x2xf32, #tpu.memory_space<smem>>, %arg4: memref<16x128xf32, #tpu.memory_space<vmem>>) attributes {dimension_semantics = [#tpu.dimension_semantics<parallel>], iteration_bounds = array<i64: 1>, scalar_prefetch = 0 : i64, scratch_operands = 0 : i64, tpu.core_type = #tpu.core_type<tc>, window_params = [{transform_indices = @transform_0, window_bounds = array<i64: 2, 16, 128>}, {transform_indices = @transform_1, window_bounds = array<i64: 16, 128>}, {transform_indices = @transform_2, window_bounds = array<i64: 3, 2>}, {transform_indices = @transform_3, window_bounds = array<i64: 16, 128>}]} {
    %c0 = arith.constant 0 : index
    %c0_0 = arith.constant 0 : index
    %c0_1 = arith.constant 0 : index
    %0 = vector.load %arg1[%c0, %c0_0, %c0_1] : memref<2x16x128xf32, #tpu.memory_space<vmem>>, vector<2x16x128xf32>
    %c0_2 = arith.constant 0 : index
    %c0_3 = arith.constant 0 : index
    %1 = vector.load %arg2[%c0_2, %c0_3] : memref<16x128xi32, #tpu.memory_space<vmem>>, vector<16x128xi32>
    %c-1_i32 = arith.constant -1 : i32
    %2 = vector.broadcast %c-1_i32 : i32 to vector<16x128xi32>
    %3 = arith.cmpi ne, %1, %2 : vector<16x128xi32>
    %c0_i32 = arith.constant 0 : i32
    %c1_i32 = arith.constant 1 : i32
    %4 = vector.broadcast %c0_i32 : i32 to vector<16x128xi32>
    %5 = arith.maxsi %4, %1 : vector<16x128xi32>
    %6 = vector.broadcast %c1_i32 : i32 to vector<16x128xi32>
    %7 = arith.minsi %6, %5 : vector<16x128xi32>
    %cst = arith.constant dense<0xFF800000> : vector<16x128xf32>
    %8 = vector.multi_reduction <maximumf>, %0, %cst [0] : vector<2x16x128xf32> to vector<16x128xf32>
    %9 = vector.shape_cast %8 : vector<16x128xf32> to vector<1x16x128xf32>
    %10 = vector.broadcast %9 : vector<1x16x128xf32> to vector<2x16x128xf32>
    %11 = arith.subf %0, %10 : vector<2x16x128xf32>
    %12 = math.exp %11 : vector<2x16x128xf32>
    %cst_4 = arith.constant dense<0.000000e+00> : vector<16x128xf32>
    %13 = vector.multi_reduction <add>, %12, %cst_4 [0] : vector<2x16x128xf32> to vector<16x128xf32>
    %cst_5 = arith.constant 0.000000e+00 : f32
    %14 = vector.broadcast %cst_5 : f32 to vector<16x128xf32>
    %cst_6 = arith.constant 0.000000e+00 : f32
    %15 = vector.broadcast %cst_6 : f32 to vector<16x128xf32>
    %cst_7 = arith.constant 0.000000e+00 : f32
    %16 = vector.broadcast %cst_7 : f32 to vector<16x128xf32>
    %cst_8 = arith.constant 0.000000e+00 : f32
    %17 = vector.broadcast %cst_8 : f32 to vector<16x128xf32>
    %c0_i32_9 = arith.constant 0 : i32
    %18 = vector.broadcast %c0_i32_9 : i32 to vector<16x128xi32>
    %19 = arith.cmpi eq, %7, %18 : vector<16x128xi32>
    %20 = vector.extract_strided_slice %12 {offsets = [0, 0, 0], sizes = [1, 16, 128], strides = [1, 1, 1]} : vector<2x16x128xf32> to vector<1x16x128xf32>
    %21 = vector.shape_cast %20 : vector<1x16x128xf32> to vector<16x128xf32>
    %22 = arith.select %19, %21, %14 : vector<16x128xi1>, vector<16x128xf32>
    %c0_10 = arith.constant 0 : index
    %c0_11 = arith.constant 0 : index
    %23 = memref.load %arg3[%c0_10, %c0_11] : memref<3x2xf32, #tpu.memory_space<smem>>
    %24 = vector.broadcast %23 : f32 to vector<16x128xf32>
    %25 = arith.select %19, %24, %15 : vector<16x128xi1>, vector<16x128xf32>
    %c1 = arith.constant 1 : index
    %c0_12 = arith.constant 0 : index
    %26 = memref.load %arg3[%c1, %c0_12] : memref<3x2xf32, #tpu.memory_space<smem>>
    %27 = vector.broadcast %26 : f32 to vector<16x128xf32>
    %28 = arith.select %19, %27, %16 : vector<16x128xi1>, vector<16x128xf32>
    %c2 = arith.constant 2 : index
    %c0_13 = arith.constant 0 : index
    %29 = memref.load %arg3[%c2, %c0_13] : memref<3x2xf32, #tpu.memory_space<smem>>
    %30 = vector.broadcast %29 : f32 to vector<16x128xf32>
    %31 = arith.select %19, %30, %17 : vector<16x128xi1>, vector<16x128xf32>
    %c1_i32_14 = arith.constant 1 : i32
    %32 = vector.broadcast %c1_i32_14 : i32 to vector<16x128xi32>
    %33 = arith.cmpi eq, %7, %32 : vector<16x128xi32>
    %34 = vector.extract_strided_slice %12 {offsets = [1, 0, 0], sizes = [1, 16, 128], strides = [1, 1, 1]} : vector<2x16x128xf32> to vector<1x16x128xf32>
    %35 = vector.shape_cast %34 : vector<1x16x128xf32> to vector<16x128xf32>
    %36 = arith.select %33, %35, %22 : vector<16x128xi1>, vector<16x128xf32>
    %c0_15 = arith.constant 0 : index
    %c1_16 = arith.constant 1 : index
    %37 = memref.load %arg3[%c0_15, %c1_16] : memref<3x2xf32, #tpu.memory_space<smem>>
    %38 = vector.broadcast %37 : f32 to vector<16x128xf32>
    %39 = arith.select %33, %38, %25 : vector<16x128xi1>, vector<16x128xf32>
    %c1_17 = arith.constant 1 : index
    %c1_18 = arith.constant 1 : index
    %40 = memref.load %arg3[%c1_17, %c1_18] : memref<3x2xf32, #tpu.memory_space<smem>>
    %41 = vector.broadcast %40 : f32 to vector<16x128xf32>
    %42 = arith.select %33, %41, %28 : vector<16x128xi1>, vector<16x128xf32>
    %c2_19 = arith.constant 2 : index
    %c1_20 = arith.constant 1 : index
    %43 = memref.load %arg3[%c2_19, %c1_20] : memref<3x2xf32, #tpu.memory_space<smem>>
    %44 = vector.broadcast %43 : f32 to vector<16x128xf32>
    %45 = arith.select %33, %44, %31 : vector<16x128xi1>, vector<16x128xf32>
    %46 = arith.divf %36, %13 : vector<16x128xf32>
    %47 = arith.subf %46, %39 : vector<16x128xf32>
    %cst_21 = arith.constant -1.098610e+01 : f32
    %48 = vector.broadcast %cst_21 : f32 to vector<16x128xf32>
    %49 = arith.mulf %48, %47 : vector<16x128xf32>
    %50 = math.exp %49 : vector<16x128xf32>
    %cst_22 = arith.constant 5.000000e-01 : f32
    %51 = vector.broadcast %cst_22 : f32 to vector<16x128xf32>
    %52 = arith.mulf %51, %50 : vector<16x128xf32>
    %cst_23 = arith.constant 1.000000e+00 : f32
    %53 = vector.broadcast %cst_23 : f32 to vector<16x128xf32>
    %54 = arith.subf %50, %53 : vector<16x128xf32>
    %cst_24 = arith.constant 5.000000e-01 : f32
    %55 = vector.broadcast %cst_24 : f32 to vector<16x128xf32>
    %56 = arith.mulf %55, %54 : vector<16x128xf32>
    %cst_25 = arith.constant 1.000000e+00 : f32
    %57 = vector.broadcast %cst_25 : f32 to vector<16x128xf32>
    %58 = arith.addf %57, %56 : vector<16x128xf32>
    %59 = arith.divf %52, %58 : vector<16x128xf32>
    %60 = arith.subf %59, %42 : vector<16x128xf32>
    %cst_26 = arith.constant 1.500000e+00 : f32
    %61 = vector.broadcast %cst_26 : f32 to vector<16x128xf32>
    %62 = arith.mulf %60, %61 : vector<16x128xf32>
    %63 = arith.mulf %45, %62 : vector<16x128xf32>
    %cst_27 = arith.constant 0xFF800000 : f32
    %64 = vector.broadcast %cst_27 : f32 to vector<16x128xf32>
    %65 = arith.select %3, %63, %64 : vector<16x128xi1>, vector<16x128xf32>
    %c0_28 = arith.constant 0 : index
    %c0_29 = arith.constant 0 : index
    %66 = vector.load %arg4[%c0_28, %c0_29] : memref<16x128xf32, #tpu.memory_space<vmem>>, vector<16x128xf32>
    tpu.vector_store %arg4[%c0_28, %c0_29], %65 {strides = array<i32>} : memref<16x128xf32, #tpu.memory_space<vmem>>, vector<16x128xf32>,
    return
  }
  func.func @transform_0(%arg0: i32) -> (i32, i32, i32) {
    %c0_i32 = arith.constant 0 : i32
    %c0_i32_0 = arith.constant 0 : i32
    %c0_i32_1 = arith.constant 0 : i32
    return %c0_i32, %arg0, %c0_i32_0 : i32, i32, i32
  }
  func.func @transform_1(%arg0: i32) -> (i32, i32) {
    %c0_i32 = arith.constant 0 : i32
    %c0_i32_0 = arith.constant 0 : i32
    return %arg0, %c0_i32 : i32, i32
  }
  func.func @transform_2(%arg0: i32) -> (i32, i32) {
    %c0_i32 = arith.constant 0 : i32
    %c0_i32_0 = arith.constant 0 : i32
    %c0_i32_1 = arith.constant 0 : i32
    return %c0_i32, %c0_i32_0 : i32, i32
  }
  func.func @transform_3(%arg0: i32) -> (i32, i32) {
    %c0_i32 = arith.constant 0 : i32
    %c0_i32_0 = arith.constant 0 : i32
    return %arg0, %c0_i32 : i32, i32
  }
}

</mosaic_0001>

<bundles_post_ra>
// kernel: tpu_custom_call.1
= control target key start
LH: loop header
LB: loop body
LE: loop exit
PB: predicated region body
PF: predicated region fallthrough
CT: control target
= control target key end

     0   :  { %8 = vsyncpa [#allocation3], 0  ;;  %s371_s0 = inlined_call_operand.hbm [shape: f32[2,16,128], index: 0, kind: input, shape index: {}]   ;;  %s372_s1 = inlined_call_operand.hbm [shape: s32[16,128], index: 1, kind: input, shape index: {}]   ;;  %s373_s2 = inlined_call_operand.vmem [shape: f32[3,2], index: 2, kind: input, shape index: {}]   ;;  %s374_s3 = inlined_call_operand.hbm [shape: f32[16,128], index: 3, kind: output, shape index: {}]  }
   0x1   :  { %9 = vsyncpa [#allocation7], 0 }
   0x2   :  { %10 = vsyncpa [#allocation5], 0 }
   0x3   :  { %11 = vsyncpa [#allocation4], 0  ;;  %s286_s12 = smov [#allocation2]  }
   0x4   :  { %s17_s13 = sshll.u32 %s286_s12, 4  ;;  %s18_s13 = int_to_ptr.vmem [resolvable:$true] %s17_s13 }
   0x5   :  { %s214_s14 = scalar_lea.vmem %s18_s13, 512  ;;  %p219_p1 = scmp.lt.s32.totalorder %s18_s13, %s18_s13 }
   0x6   :  { %p215_p0 = scmp.ne.s32.totalorder %s18_s13, %s214_s14  ;;  %p220_p2 = scmp.lt.s32.totalorder %s214_s14, %s214_s14 }
   0x8   :  { %p221_p3 = por %p220_p2, %p219_p1 }
   0xa   :  { %p222_p4 = pnand %p221_p3, %p215_p0 }
   0xc   :  { %225 = shalt.err (!%p222_p4)
}
   0xd   :  { %s287_s15 = smov 128   ;;  %s288_s16 = smov 8  }
   0xe   :  { %23 = dma.hbm_to_vmem [thread:$0]  %s371_s0, 512, %s18_s13, [#allocation3], %s287_s15, %s287_s15, %s288_s16  }
   0xf   :  { %s289_s19 = smov [#allocation6]   ;;  %s42_s23 = sshll.u32 %s373_s2, 4  ;;  %s43_s23 = int_to_ptr.vmem [resolvable:$true] %s42_s23 }
  0x10   :  { %s29_s20 = sshll.u32 %s289_s19, 4  ;;  %s30_s20 = int_to_ptr.vmem [resolvable:$true] %s29_s20 }
  0x11   :  { %s234_s24 = scalar_lea.vmem %s30_s20, 256  ;;  %p239_p6 = scmp.lt.s32.totalorder %s30_s20, %s30_s20 }
  0x12   :  { %p235_p5 = scmp.ne.s32.totalorder %s30_s20, %s234_s24  ;;  %p240_p7 = scmp.lt.s32.totalorder %s234_s24, %s234_s24 }
  0x14   :  { %p241_p8 = por %p240_p7, %p239_p6 }
  0x16   :  { %p242_p9 = pnand %p241_p8, %p235_p5 }
  0x18   :  { %245 = shalt.err (!%p242_p9)
}
  0x19   :  { %35 = dma.hbm_to_vmem [thread:$0]  %s372_s1, 256, %s30_s20, [#allocation7], %s287_s15, %s287_s15, %s288_s16  }
  0x1a   :  { %s246_s26 = scalar_lea.vmem %s43_s23, 64  ;;  %p251_p11 = scmp.lt.s32.totalorder %s43_s23, %s43_s23 }
  0x1b   :  { %p247_p10 = scmp.ne.s32.totalorder %s43_s23, %s246_s26  ;;  %p252_p12 = scmp.lt.s32.totalorder %s246_s26, %s246_s26 }
  0x1d   :  { %p253_p13 = por %p252_p12, %p251_p11 }
  0x1f   :  { %p254_p0 = pnand %p253_p13, %p247_p10 }
  0x21   :  { %257 = shalt.err (!%p254_p0)
}
  0x22   :  { %s290_s2 = smov [#allocation8]  }
  0x23   :  { %45 = dma.vmem_to_smem %s43_s23, 64, %s290_s2, [#allocation5]  }
  0x24   :  { %278 = dma.done.wait [#allocation3], 512  }
  0x25   :  { %279 = vsyncadd [#allocation3], 4294966784 }
  0x26   :  { %280 = dma.done.wait [#allocation7], 256  }
  0x27   :  { %281 = vsyncadd [#allocation7], 4294967040 }
  0x28   :  { %282 = dma.done.wait [#allocation5], 64  }
  0x29   :  { %283 = vsyncadd [#allocation5], 4294967232 }
  0x2a   :  { %55 = sfence }
  0x2b   :  { %v56_v0 = vld [vmem:[#allocation2] sm:$0xff]  ;;  %v58_v1 = vld [vmem:[#allocation2 + $0x10] sm:$0xff]  ;;  %v57_v3 = vld [vmem:[#allocation2 + $0x8] sm:$0xff]  ;;  %s92_s1 = sld [smem:[#allocation8]]  ;;  %s291_s5 = smov [#allocation9]  }
  0x2c   :  { %v72_v2 = vmax.f32 %v56_v0, %v58_v1  ;;  %v59_v4 = vld [vmem:[#allocation2 + $0x18] sm:$0xff]  ;;  %v327_v14 = vld [vmem:[#allocation6] sm:$0xff]  ;;  %v330_v15 = vld [vmem:[#allocation6 + $0x8] sm:$0xff]  ;;  %s175_s27 = sld [smem:[#allocation8 + $0x1]]  ;;  %s159_s6 = sshll.u32 %s291_s5, 4  ;;  %s160_s6 = int_to_ptr.vmem [resolvable:$true] %s159_s6 }
  0x2d   :  { %v73_v5 = vmax.f32 %v57_v3, %v59_v4  ;;  %vm64_vm0 = vcmp.gt.s32.totalorder %v327_v14, 0  ;;  %vm66_vm1 = vcmp.gt.s32.totalorder %v330_v15, 0  ;;  %s173_s28 = sld [smem:[#allocation8 + $0x80]]  ;;  %vm62_vm8 = vcmp.ne.s32.totalorder %v327_v14, 4294967295  ;;  %s258_s7 = scalar_lea.vmem %s160_s6, 256 }
  0x2e   :  { %v74_v6 = vsub.f32 %v56_v0, %v72_v2  ;;  %v76_v7 = vsub.f32 %v58_v1, %v72_v2  ;;  %v65_v17 = vsel %vm64_vm0, %v327_v14, 0  ;;  %v67_v21 = vsel %vm66_vm1, %v330_v15, 0  ;;  %s176_s29 = sld [smem:[#allocation8 + $0x81]]  ;;  %p259_p1 = scmp.ne.s32.totalorder %s160_s6, %s258_s7 }
  0x2f   :  { %v75_v8 = vsub.f32 %v57_v3, %v73_v5  ;;  %v77_v11 = vsub.f32 %v59_v4, %v73_v5  ;;  %vm68_vm2 = vcmp.lt.s32.totalorder %v65_v17, 1  ;;  %vm70_vm3 = vcmp.lt.s32.totalorder %v67_v21, 1  ;;  %s174_s30 = sld [smem:[#allocation8 + $0x100]]  ;;  %p263_p2 = scmp.lt.s32.totalorder %s160_s6, %s160_s6 }
  0x30   :  { %v78_v9 = vmul.f32 1.442695, %v74_v6  ;;  %v82_v10 = vmul.f32 1.442695, %v76_v7  ;;  %v69_v24 = vsel %vm68_vm2, %v65_v17, 1  ;;  %v335_v25 = vsel %vm70_vm3, %v67_v21, 1  ;;  %p264_p3 = scmp.lt.s32.totalorder %s258_s7, %s258_s7 }
  0x31   :  { %v80_v12 = vmul.f32 1.442695, %v75_v8  ;;  %v84_v13 = vmul.f32 1.442695, %v77_v11  ;;  %vm88_vm4 = vcmp.eq.s32.totalorder %v69_v24, 0  ;;  %v93_v26 = vstv %s92_s1  ;;  %s177_s4 = sld [smem:[#allocation8 + $0x101]] }
  0x32   :  { %186 = vpow2.f32 %v78_v9  ;;  %vm104_vm5 = vcmp.eq.s32.totalorder %v69_v24, 1  ;;  %vm89_vm6 = vcmp.eq.s32.totalorder %v335_v25, 0  ;;  %v94_v28 = vsel %vm88_vm4, %v93_v26, 0.0  ;;  %p265_p4 = por %p264_p3, %p263_p2 }
  0x33   :  { %188 = vpow2.f32 %v82_v10  ;;  %v109_v29 = vstv %s175_s27  ;;  %vm105_vm7 = vcmp.eq.s32.totalorder %v335_v25, 1  ;;  %v95_v34 = vsel %vm89_vm6, %v93_v26, 0.0 }
  0x34   :  { %190 = vpow2.f32 %v80_v12  ;;  %v110_v33 = vsel %vm104_vm5, %v109_v29, %v94_v28  ;;  %v111_v39 = vsel %vm105_vm7, %v109_v29, %v95_v34  ;;  %v97_v54 = vstv %s173_s28  ;;  %p266_p5 = pnand %p265_p4, %p259_p1 }
  0x35   :  { %192 = vpow2.f32 %v84_v13  ;;  %v98_v55 = vsel %vm88_vm4, %v97_v54, 0.0  ;;  %v113_v56 = vstv %s176_s29  ;;  %v101_v58 = vstv %s174_s30 }
  0x36   :  { %v114_v60 = vsel %vm104_vm5, %v113_v56, %v98_v55  ;;  %v99_v61 = vsel %vm89_vm6, %v97_v54, 0.0  ;;  %v102_v63 = vsel %vm88_vm4, %v101_v58, 0.0  ;;  %v103_v6 = vsel %vm89_vm6, %v101_v58, 0.0 }
  0x37   :  { %v117_v0 = vstv %s177_s4  ;;  %v115_v4 = vsel %vm105_vm7, %v113_v56, %v99_v61  ;;  %vm63_vm9 = vcmp.ne.s32.totalorder %v330_v15, 4294967295 }
  0x38   :  { %v118_v5 = vsel %vm104_vm5, %v117_v0, %v102_v63  ;;  %v119_v11 = vsel %vm105_vm7, %v117_v0, %v103_v6 }
  0x3f   :  { %v187_v16 = vpop.eup %186 }
  0x40   :  { %v189_v18 = vpop.eup %188  ;;  %v90_v27 = vsel %vm88_vm4, %v187_v16, 0.0 }
  0x41   :  { %v191_v19 = vpop.eup %190  ;;  %v86_v20 = vadd.f32 %v189_v18, %v187_v16  ;;  %v106_v30 = vsel %vm104_vm5, %v189_v18, %v90_v27 }
  0x42   :  { %v193_v22 = vpop.eup %192  ;;  %v91_v31 = vsel %vm89_vm6, %v191_v19, 0.0 }
  0x43   :  { %194 = vrcp.f32 %v86_v20  ;;  %v87_v23 = vadd.f32 %v193_v22, %v191_v19  ;;  %v107_v36 = vsel %vm105_vm7, %v193_v22, %v91_v31 }
  0x45   :  { %196 = vrcp.f32 %v87_v23 }
  0x50   :  { %v195_v32 = vpop.eup %194 }
  0x51   :  { %v121_v35 = vmul.f32 %v195_v32, %v106_v30 }
  0x52   :  { %v197_v37 = vpop.eup %196 }
  0x53   :  { %v124_v38 = vsub.f32 %v121_v35, %v110_v33  ;;  %v123_v40 = vmul.f32 %v197_v37, %v107_v36 }
  0x55   :  { %v126_v41 = vmul.f32 -10.9861, %v124_v38  ;;  %v125_v42 = vsub.f32 %v123_v40, %v111_v39 }
  0x57   :  { %v128_v43 = vmul.f32 1.442695, %v126_v41  ;;  %v127_v44 = vmul.f32 -10.9861, %v125_v42 }
  0x59   :  { %198 = vpow2.f32 %v128_v43  ;;  %v130_v45 = vmul.f32 1.442695, %v127_v44 }
  0x5b   :  { %200 = vpow2.f32 %v130_v45 }
  0x66   :  { %v199_v46 = vpop.eup %198 }
  0x67   :  { %v178_v47 = vadd.f32 -1.0, %v199_v46  ;;  %v132_v57 = vmul.f32 0.5, %v199_v46 }
  0x68   :  { %v201_v48 = vpop.eup %200 }
  0x69   :  { %v136_v49 = vmul.f32 0.5, %v178_v47  ;;  %v179_v50 = vadd.f32 -1.0, %v201_v48  ;;  %v133_v62 = vmul.f32 0.5, %v201_v48 }
  0x6b   :  { %v138_v51 = vadd.f32 1.0, %v136_v49  ;;  %v137_v52 = vmul.f32 0.5, %v179_v50 }
  0x6d   :  { %202 = vrcp.f32 %v138_v51  ;;  %v139_v53 = vadd.f32 1.0, %v137_v52 }
  0x6f   :  { %204 = vrcp.f32 %v139_v53 }
  0x7a   :  { %v203_v59 = vpop.eup %202 }
  0x7b   :  { %v141_v1 = vmul.f32 %v203_v59, %v132_v57 }
  0x7c   :  { %v205_v2 = vpop.eup %204 }
  0x7d   :  { %v144_v3 = vsub.f32 %v141_v1, %v114_v60  ;;  %v143_v7 = vmul.f32 %v205_v2, %v133_v62 }
  0x7f   :  { %v146_v8 = vmul.f32 1.5, %v144_v3  ;;  %v145_v9 = vsub.f32 %v143_v7, %v115_v4 }
  0x81   :  { %v148_v10 = vmul.f32 %v146_v8, %v118_v5  ;;  %v147_v12 = vmul.f32 1.5, %v145_v9 }
  0x83   :  { %v150_v13 = vsel %vm62_vm8, %v148_v10, -inf  ;;  %v149_v16 = vmul.f32 %v147_v12, %v119_v11 }
  0x84   :  { %152 = vst [vmem:[#allocation9] sm:$0xff] %v150_v13 }
  0x85   :  { %v151_v17 = vsel %vm63_vm9, %v149_v16, -inf }
  0x86   :  { %153 = vst [vmem:[#allocation9 + $0x8] sm:$0xff] %v151_v17 }
  0x87   :  { %269 = shalt.err (!%p266_p5)
}
  0x88   :  { %165 = dma.vmem_to_hbm [thread:$0]  %s160_s6, 256, %s374_s3, [#allocation4], %s287_s15, %s287_s15, %s288_s16  }
  0x89   :  { %284 = dma.done.wait [#allocation4], 256  }
  0x8a   :  { %285 = vsyncadd [#allocation4], 4294967040 }
  0x8b   :  { %169 = vsyncpa [#allocation3], 1 }
  0x8c   :  { %170 = vsyncpa [#allocation7], 1 }
  0x8d   :  { %171 = vsyncpa [#allocation4], 1 }
  0x8e   :  { %172 = vsyncpa [#allocation5], 1 }

</bundles_post_ra>
